<compile_context>
chip_gen: v5e
topology: v5e:2x2
jax: 0.10.0
libtpu: 0.0.40
codegen_flags: <defaults>
</compile_context>

<pallas_src>
import math
from functools import partial

import jax
import jax.numpy as jnp
import numpy as np
from jax import lax
from jax.experimental import pallas as pl
from jax.experimental.pallas import tpu as pltpu


# ----------------------------------------------------------------------------
# Kernel 1: fused [LayerNorm] -> linear -> [relu] -> [+ residual]
# ----------------------------------------------------------------------------
def _fused_linear_kernel(*refs, has_ln, has_res, relu, eps):
    idx = 0
    x_ref = refs[idx]; idx += 1
    if has_ln:
        g_ref, be_ref = refs[idx], refs[idx + 1]; idx += 2
    w_ref, b_ref = refs[idx], refs[idx + 1]; idx += 2
    if has_res:
        r_ref = refs[idx]; idx += 1
    o_ref = refs[idx]

    x = x_ref[...].astype(jnp.float32)
    if has_ln:
        d = x.shape[-1]
        mean = jnp.mean(x, axis=-1, keepdims=True)
        xc = x - mean
        # torch.Tensor.std defaults to the unbiased estimator (divide by N-1),
        # and the reference LayerNorm adds eps to std (not to var).
        var = jnp.sum(xc * xc, axis=-1, keepdims=True) * (1.0 / (d - 1))
        inv = 1.0 / (jnp.sqrt(var) + eps)          # tiny (rows,1) divide
        x = g_ref[...].astype(jnp.float32) * (xc * inv) + be_ref[...].astype(jnp.float32)

    y = jnp.dot(x, w_ref[...].astype(jnp.float32),
                preferred_element_type=jnp.float32) + b_ref[...].astype(jnp.float32)
    if relu:
        y = jnp.maximum(y, 0.0)
    if has_res:
        y = y + r_ref[...].astype(jnp.float32)
    o_ref[...] = y.astype(o_ref.dtype)


def pallas_linear(x, w, b, *, gamma=None, beta=None, residual=None, relu=False,
                  eps=1e-6, block_m=128):
    """y = [LN_{gamma,beta}](x) @ w + b, optional relu, optional + residual.

    x: (M, K), w: (K, N), b: (N,), gamma/beta: (K,), residual: (M, N).
    Tiled over M (rows); K and N are small here.
    # TODO(synk): add a K grid axis + f32 VMEM accumulator for large K.
    """
    M, K = x.shape
    N = w.shape[1]
    has_ln = gamma is not None
    has_res = residual is not None
    bm = min(block_m, M)

    in_specs = [pl.BlockSpec((bm, K), lambda i: (i, 0))]
    args = [x]
    if has_ln:
        in_specs += [pl.BlockSpec((1, K), lambda i: (0, 0)),
                     pl.BlockSpec((1, K), lambda i: (0, 0))]
        args += [gamma.reshape(1, K), beta.reshape(1, K)]
    in_specs += [pl.BlockSpec((K, N), lambda i: (0, 0)),
                 pl.BlockSpec((1, N), lambda i: (0, 0))]
    args += [w, b.reshape(1, N)]
    if has_res:
        in_specs.append(pl.BlockSpec((bm, N), lambda i: (i, 0)))
        args.append(residual)

    kernel = partial(_fused_linear_kernel, has_ln=has_ln, has_res=has_res,
                     relu=relu, eps=eps)
    return pl.pallas_call(
        kernel,
        out_shape=jax.ShapeDtypeStruct((M, N), x.dtype),
        grid=(pl.cdiv(M, bm),),
        in_specs=in_specs,
        out_specs=pl.BlockSpec((bm, N), lambda i: (i, 0)),
        compiler_params=pltpu.CompilerParams(dimension_semantics=("parallel",)),
    )(*args)


# ----------------------------------------------------------------------------
# Kernel 2: multi-head attention, all heads of one batch element per grid step.
# q/k/v stay packed along the feature (lane) dimension; no p_attn output.
# ----------------------------------------------------------------------------
def _mha_kernel(*refs, num_heads, d_model, scale, shared, has_bias,
                q_off, k_off, v_off):
    o_ref = refs[-1]
    q_tile = refs[0][0]                                     # (Sq, Wq)
    kv_tile = q_tile if shared else refs[1][0]              # (Sk, Wkv)
    bias = refs[1 if shared else 2][0] if has_bias else None  # (Sq, Sk) additive

    d_k = d_model // num_heads
    # 1/sqrt(d_k) folded into q once (cheaper than scaling the (Sq,Sk) scores).
    q = q_tile[:, q_off:q_off + d_model].astype(jnp.float32) * scale   # (Sq, D)
    k = kv_tile[:, k_off:k_off + d_model].astype(jnp.float32)          # (Sk, D)
    v = kv_tile[:, v_off:v_off + d_model].astype(jnp.float32)          # (Sk, D)

    # Per-head column masks (exact zeros) keep every matmul full-width /
    # lane-dense with no narrow slicing or concatenation; masked columns
    # contribute exactly 0 so the result equals the per-head computation.
    # TODO(synk): for d_model > 128 switch to per-head slices (or a reshaped
    # batched dot) to avoid redundant MXU contraction, and add an Sk grid axis
    # with flash-style online softmax so (Sq,Sk) never exceeds VMEM on v7x.
    col = lax.broadcasted_iota(jnp.int32, (1, d_model), 1)
    out = jnp.zeros((q.shape[0], d_model), jnp.float32)
    for h in range(num_heads):                               # static unroll
        head = ((col >= h * d_k) & (col < (h + 1) * d_k)).astype(jnp.float32)
        s = lax.dot_general(q * head, k, (((1,), (1,)), ((), ())),
                            preferred_element_type=jnp.float32)        # (Sq, Sk)
        if has_bias:
            s = s + bias
        m = jnp.max(s, axis=-1, keepdims=True)
        e = jnp.exp(s - m)
        p = e * pl.reciprocal(jnp.sum(e, axis=-1, keepdims=True), approx=True)
        out = out + jnp.dot(p, v * head, preferred_element_type=jnp.float32)
    # Single lane-dense store, already in (S, h*d_k) layout for the out-proj.
    o_ref[0] = out.astype(o_ref.dtype)


def pallas_mha(q_arr, kv_arr, bias, *, num_heads, d_model):
    """Multi-head attention.

    q_arr : (B, Sq, 3*d_model) fused q|k|v when kv_arr is None (self-attention),
            else (B, Sq, d_model) queries.
    kv_arr: None, or (B, Sk, 2*d_model) fused k|v (cross-attention).
    bias  : None, or (B, Sq, Sk) additive mask bias (0 keep / -1e9 masked).
    Returns (B, Sq, d_model).
    """
    shared = kv_arr is None
    B, Sq, _ = q_arr.shape
    Sk = Sq if shared else kv_arr.shape[1]
    has_bias = bias is not None

    in_specs = [pl.BlockSpec((1, Sq, q_arr.shape[-1]), lambda b: (b, 0, 0))]
    args = [q_arr]
    if not shared:
        in_specs.append(pl.BlockSpec((1, Sk, kv_arr.shape[-1]), lambda b: (b, 0, 0)))
        args.append(kv_arr)
    if has_bias:
        in_specs.append(pl.BlockSpec((1, Sq, Sk), lambda b: (b, 0, 0)))
        args.append(bias)

    kernel = partial(
        _mha_kernel, num_heads=num_heads, d_model=d_model,
        scale=1.0 / math.sqrt(d_model // num_heads),
        shared=shared, has_bias=has_bias,
        q_off=0,
        k_off=d_model if shared else 0,
        v_off=2 * d_model if shared else d_model)

    return pl.pallas_call(
        kernel,
        out_shape=jax.ShapeDtypeStruct((B, Sq, d_model), q_arr.dtype),
        grid=(B,),
        in_specs=in_specs,
        out_specs=pl.BlockSpec((1, Sq, d_model), lambda b: (b, 0, 0)),
        compiler_params=pltpu.CompilerParams(dimension_semantics=("parallel",)),
    )(*args)


def mask_to_bias(mask):
    """0/1 mask -> additive bias (0 keep, -1e9 masked). None passes through."""
    if mask is None:
        return None
    return (mask.astype(jnp.float32) - 1.0) * 1e9


# ----------------------------------------------------------------------------
# DecoderLayerSimple wrapper (standard MHA + position-wise FFN sublayers)
# ----------------------------------------------------------------------------
class DecoderLayerSimplePallas:
    def __init__(self, size, h, d_ff, *, key, eps=1e-6):
        assert size % h == 0
        self.size, self.h, self.d_k, self.eps = size, h, size // h, eps
        keys = iter(jax.random.split(key, 24))

        def lin(fan_in, fan_out):
            bound = 1.0 / math.sqrt(fan_in)
            w = jax.random.uniform(next(keys), (fan_in, fan_out), jnp.float32, -bound, bound)
            b = jax.random.uniform(next(keys), (fan_out,), jnp.float32, -bound, bound)
            return w, b

        # self-attention projections; q|k|v fused into one (D, 3D) matmul
        self.sa_wq, self.sa_bq = lin(size, size)
        self.sa_wk, self.sa_bk = lin(size, size)
        self.sa_wv, self.sa_bv = lin(size, size)
        self.sa_wo, self.sa_bo = lin(size, size)
        self.sa_w_qkv = jnp.concatenate([self.sa_wq, self.sa_wk, self.sa_wv], axis=1)
        self.sa_b_qkv = jnp.concatenate([self.sa_bq, self.sa_bk, self.sa_bv])
        # cross-attention over memory; k|v fused into one (D, 2D) matmul
        self.ca_wq, self.ca_bq = lin(size, size)
        self.ca_wk, self.ca_bk = lin(size, size)
        self.ca_wv, self.ca_bv = lin(size, size)
        self.ca_wo, self.ca_bo = lin(size, size)
        self.ca_w_kv = jnp.concatenate([self.ca_wk, self.ca_wv], axis=1)
        self.ca_b_kv = jnp.concatenate([self.ca_bk, self.ca_bv])
        # position-wise feed-forward
        self.ff_w1, self.ff_b1 = lin(size, d_ff)
        self.ff_w2, self.ff_b2 = lin(d_ff, size)
        # 3 LayerNorms (PyTorch init: weight=1, bias=0)
        self.ln_g = [jnp.ones((size,), jnp.float32) for _ in range(3)]
        self.ln_b = [jnp.zeros((size,), jnp.float32) for _ in range(3)]

    def __call__(self, x, tgt_mask, memory, memory_pad_mask):
        # TODO(synk): dropout omitted (module evaluated in eval() mode -> identity).
        B, Sq, D = x.shape
        Sk = memory.shape[1]
        x2 = x.reshape(B * Sq, D)

        # -- sublayer 0: x + self_attn(LN(x), LN(x), LN(x), tgt_mask) ---------
        qkv = pallas_linear(x2, self.sa_w_qkv, self.sa_b_qkv,
                            gamma=self.ln_g[0], beta=self.ln_b[0], eps=self.eps)
        ctx = pallas_mha(qkv.reshape(B, Sq, 3 * D), None, mask_to_bias(tgt_mask),
                         num_heads=self.h, d_model=D)
        x2 = pallas_linear(ctx.reshape(B * Sq, D), self.sa_wo, self.sa_bo,
                           residual=x2)

        # -- sublayer 1: x + src_attn(LN(x), memory, memory, memory_pad_mask) -
        q = pallas_linear(x2, self.ca_wq, self.ca_bq,
                          gamma=self.ln_g[1], beta=self.ln_b[1], eps=self.eps)
        kv = pallas_linear(memory.reshape(B * Sk, D), self.ca_w_kv, self.ca_b_kv)
        ctx = pallas_mha(q.reshape(B, Sq, D), kv.reshape(B, Sk, 2 * D),
                         mask_to_bias(memory_pad_mask),
                         num_heads=self.h, d_model=D)
        x2 = pallas_linear(ctx.reshape(B * Sq, D), self.ca_wo, self.ca_bo,
                           residual=x2)

        # -- sublayer 2: x + FFN(LN(x)) ----------------------------------------
        hid = pallas_linear(x2, self.ff_w1, self.ff_b1,
                            gamma=self.ln_g[2], beta=self.ln_b[2], eps=self.eps,
                            relu=True)
        x2 = pallas_linear(hid, self.ff_w2, self.ff_b2, residual=x2)

        return x2.reshape(B, Sq, D)


# ----------------------------------------------------------------------------
# Pure-JAX reference (mirrors PyTorch semantics) for validation
# ----------------------------------------------------------------------------
def reference_forward(layer, x, tgt_mask, memory, memory_pad_mask):
    eps = layer.eps

    def ln(t, g, b):
        mean = jnp.mean(t, axis=-1, keepdims=True)
        std = jnp.sqrt(jnp.sum((t - mean) ** 2, axis=-1, keepdims=True)
                       / (t.shape[-1] - 1))
        return g * (t - mean) / (std + eps) + b

    def mha(xq, xk, xv, mask, wq, bq, wk, bk, wv, bv, wo, bo):
        B, Sq, D = xq.shape
        Sk = xk.shape[1]
        h, dk = layer.h, layer.d_k
        q = (xq @ wq + bq).reshape(B, Sq, h, dk).transpose(0, 2, 1, 3)
        k = (xk @ wk + bk).reshape(B, Sk, h, dk).transpose(0, 2, 1, 3)
        v = (xv @ wv + bv).reshape(B, Sk, h, dk).transpose(0, 2, 1, 3)
        s = jnp.einsum("bhqd,bhkd->bhqk", q, k) / math.sqrt(dk)
        if mask is not None:
            s = jnp.where(mask[:, None] == 0, -1e9, s)
        p = jax.nn.softmax(s, axis=-1)
        ctx = jnp.einsum("bhqk,bhkd->bhqd", p, v)
        ctx = ctx.transpose(0, 2, 1, 3).reshape(B, Sq, D)
        return ctx @ wo + bo

    y = ln(x, layer.ln_g[0], layer.ln_b[0])
    x = x + mha(y, y, y, tgt_mask,
                layer.sa_wq, layer.sa_bq, layer.sa_wk, layer.sa_bk,
                layer.sa_wv, layer.sa_bv, layer.sa_wo, layer.sa_bo)

    y = ln(x, layer.ln_g[1], layer.ln_b[1])
    x = x + mha(y, memory, memory, memory_pad_mask,
                layer.ca_wq, layer.ca_bq, layer.ca_wk, layer.ca_bk,
                layer.ca_wv, layer.ca_bv, layer.ca_wo, layer.ca_bo)

    y = ln(x, layer.ln_g[2], layer.ln_b[2])
    ff = jnp.maximum(y @ layer.ff_w1 + layer.ff_b1, 0.0) @ layer.ff_w2 + layer.ff_b2
    return x + ff


if __name__ == "__main__":
    B, Sq, Sk, d_model, h, d_ff = 2, 8, 16, 32, 4, 64

    root = jax.random.PRNGKey(0)
    k_param, kx, kmem, kmask = jax.random.split(root, 4)

    layer = DecoderLayerSimplePallas(d_model, h, d_ff, key=k_param)

    x = jax.random.normal(kx, (B, Sq, d_model), dtype=jnp.float32)
    memory = jax.random.normal(kmem, (B, Sk, d_model), dtype=jnp.float32)
    # causal target mask (B, Sq, Sq) and key-padding mask (B, Sq, Sk); 1 = keep.
    tgt_mask = jnp.broadcast_to(jnp.tril(jnp.ones((Sq, Sq), jnp.float32)),
                                (B, Sq, Sq))
    pad = (jax.random.uniform(kmask, (B, 1, Sk)) > 0.2).astype(jnp.float32)
    memory_pad_mask = jnp.broadcast_to(pad, (B, Sq, Sk))

    out = layer(x, tgt_mask, memory, memory_pad_mask)
    out = jax.block_until_ready(out)

    ref = reference_forward(layer, x, tgt_mask, memory, memory_pad_mask)
    np.testing.assert_allclose(np.asarray(out), np.asarray(ref),
                               rtol=2e-2, atol=2e-2)

    print("KERNEL_OK")
</pallas_src>

<mosaic_0001>
module attributes {stable_mosaic.version = 11 : i64} {
  func.func @_fused_linear_kernel(%arg0: i32, %arg1: memref<16x32xf32, #tpu.memory_space<vmem>>, %arg2: memref<1x32xf32, #tpu.memory_space<vmem>>, %arg3: memref<1x32xf32, #tpu.memory_space<vmem>>, %arg4: memref<32x96xf32, #tpu.memory_space<vmem>>, %arg5: memref<1x96xf32, #tpu.memory_space<vmem>>, %arg6: memref<16x96xf32, #tpu.memory_space<vmem>>) attributes {dimension_semantics = [#tpu.dimension_semantics<parallel>], iteration_bounds = array<i64: 1>, scalar_prefetch = 0 : i64, scratch_operands = 0 : i64, tpu.core_type = #tpu.core_type<tc>, window_params = [{transform_indices = @transform_0, window_bounds = array<i64: 16, 32>}, {pipeline_mode = #tpu.pipeline_mode<synchronous>, transform_indices = @transform_1, window_bounds = array<i64: 1, 32>}, {pipeline_mode = #tpu.pipeline_mode<synchronous>, transform_indices = @transform_2, window_bounds = array<i64: 1, 32>}, {pipeline_mode = #tpu.pipeline_mode<synchronous>, transform_indices = @transform_3, window_bounds = array<i64: 32, 96>}, {pipeline_mode = #tpu.pipeline_mode<synchronous>, transform_indices = @transform_4, window_bounds = array<i64: 1, 96>}, {transform_indices = @transform_5, window_bounds = array<i64: 16, 96>}]} {
    %c0 = arith.constant 0 : index
    %c0_0 = arith.constant 0 : index
    %0 = vector.load %arg1[%c0, %c0_0] : memref<16x32xf32, #tpu.memory_space<vmem>>, vector<16x32xf32>
    %cst = arith.constant dense<0.000000e+00> : vector<16xf32>
    %1 = vector.multi_reduction <add>, %0, %cst [1] : vector<16x32xf32> to vector<16xf32>
    %2 = vector.shape_cast %1 : vector<16xf32> to vector<16x1xf32>
    %cst_1 = arith.constant 3.200000e+01 : f32
    %3 = vector.broadcast %cst_1 : f32 to vector<16x1xf32>
    %4 = arith.divf %2, %3 : vector<16x1xf32>
    %5 = vector.broadcast %4 : vector<16x1xf32> to vector<16x32xf32>
    %6 = arith.subf %0, %5 : vector<16x32xf32>
    %7 = arith.mulf %6, %6 : vector<16x32xf32>
    %cst_2 = arith.constant dense<0.000000e+00> : vector<16xf32>
    %8 = vector.multi_reduction <add>, %7, %cst_2 [1] : vector<16x32xf32> to vector<16xf32>
    %9 = vector.shape_cast %8 : vector<16xf32> to vector<16x1xf32>
    %cst_3 = arith.constant 0.0322580636 : f32
    %10 = vector.broadcast %cst_3 : f32 to vector<16x1xf32>
    %11 = arith.mulf %9, %10 : vector<16x1xf32>
    %12 = math.sqrt %11 : vector<16x1xf32>
    %cst_4 = arith.constant 9.99999997E-7 : f32
    %13 = vector.broadcast %cst_4 : f32 to vector<16x1xf32>
    %14 = arith.addf %12, %13 : vector<16x1xf32>
    %cst_5 = arith.constant 1.000000e+00 : f32
    %15 = vector.broadcast %cst_5 : f32 to vector<16x1xf32>
    %16 = arith.divf %15, %14 : vector<16x1xf32>
    %c0_6 = arith.constant 0 : index
    %c0_7 = arith.constant 0 : index
    %17 = vector.load %arg2[%c0_6, %c0_7] : memref<1x32xf32, #tpu.memory_space<vmem>>, vector<1x32xf32>
    %18 = vector.broadcast %16 : vector<16x1xf32> to vector<16x32xf32>
    %19 = arith.mulf %6, %18 : vector<16x32xf32>
    %20 = vector.broadcast %17 : vector<1x32xf32> to vector<16x32xf32>
    %21 = arith.mulf %20, %19 : vector<16x32xf32>
    %c0_8 = arith.constant 0 : index
    %c0_9 = arith.constant 0 : index
    %22 = vector.load %arg3[%c0_8, %c0_9] : memref<1x32xf32, #tpu.memory_space<vmem>>, vector<1x32xf32>
    %23 = vector.broadcast %22 : vector<1x32xf32> to vector<16x32xf32>
    %24 = arith.addf %21, %23 : vector<16x32xf32>
    %c0_10 = arith.constant 0 : index
    %c0_11 = arith.constant 0 : index
    %25 = vector.load %arg4[%c0_10, %c0_11] : memref<32x96xf32, #tpu.memory_space<vmem>>, vector<32x96xf32>
    %cst_12 = arith.constant dense<0.000000e+00> : vector<16x96xf32>
    %26 = tpu.matmul %24, %25, %cst_12 {dimension_numbers = #tpu.dot_dimension_numbers<[1], [0], [0], [1], [0, 0, 1, 1], [], []>} : vector<16x32xf32>, vector<32x96xf32>, vector<16x96xf32> -> vector<16x96xf32>
    %c0_13 = arith.constant 0 : index
    %c0_14 = arith.constant 0 : index
    %27 = vector.load %arg5[%c0_13, %c0_14] : memref<1x96xf32, #tpu.memory_space<vmem>>, vector<1x96xf32>
    %28 = vector.broadcast %27 : vector<1x96xf32> to vector<16x96xf32>
    %29 = arith.addf %26, %28 : vector<16x96xf32>
    %c0_15 = arith.constant 0 : index
    %c0_16 = arith.constant 0 : index
    %30 = vector.load %arg6[%c0_15, %c0_16] : memref<16x96xf32, #tpu.memory_space<vmem>>, vector<16x96xf32>
    tpu.vector_store %arg6[%c0_15, %c0_16], %29 {strides = array<i32>} : memref<16x96xf32, #tpu.memory_space<vmem>>, vector<16x96xf32>,
    return
  }
  func.func @transform_0(%arg0: i32) -> (i32, i32) {
    %c0_i32 = arith.constant 0 : i32
    %c0_i32_0 = arith.constant 0 : i32
    return %arg0, %c0_i32 : i32, i32
  }
  func.func @transform_1(%arg0: i32) -> (i32, i32) {
    %c0_i32 = arith.constant 0 : i32
    %c0_i32_0 = arith.constant 0 : i32
    %c0_i32_1 = arith.constant 0 : i32
    return %c0_i32, %c0_i32_0 : i32, i32
  }
  func.func @transform_2(%arg0: i32) -> (i32, i32) {
    %c0_i32 = arith.constant 0 : i32
    %c0_i32_0 = arith.constant 0 : i32
    %c0_i32_1 = arith.constant 0 : i32
    return %c0_i32, %c0_i32_0 : i32, i32
  }
  func.func @transform_3(%arg0: i32) -> (i32, i32) {
    %c0_i32 = arith.constant 0 : i32
    %c0_i32_0 = arith.constant 0 : i32
    %c0_i32_1 = arith.constant 0 : i32
    return %c0_i32, %c0_i32_0 : i32, i32
  }
  func.func @transform_4(%arg0: i32) -> (i32, i32) {
    %c0_i32 = arith.constant 0 : i32
    %c0_i32_0 = arith.constant 0 : i32
    %c0_i32_1 = arith.constant 0 : i32
    return %c0_i32, %c0_i32_0 : i32, i32
  }
  func.func @transform_5(%arg0: i32) -> (i32, i32) {
    %c0_i32 = arith.constant 0 : i32
    %c0_i32_0 = arith.constant 0 : i32
    return %arg0, %c0_i32 : i32, i32
  }
}

</mosaic_0001>

<bundles_post_ra>
// kernel: tpu_custom_call.1
= control target key start
LH: loop header
LB: loop body
LE: loop exit
PB: predicated region body
PF: predicated region fallthrough
CT: control target
= control target key end

     0   :  { %10 = vsyncpa [#allocation3], 0  ;;  %s434_s0 = inlined_call_operand.hbm [shape: f32[16,32], index: 0, kind: input, shape index: {}]   ;;  %s435_s1 = inlined_call_operand.hbm [shape: f32[1,32], index: 1, kind: input, shape index: {}]   ;;  %s436_s2 = inlined_call_operand.vmem [shape: f32[1,32], index: 2, kind: input, shape index: {}]   ;;  %s437_s3 = inlined_call_operand.hbm [shape: f32[32,96], index: 3, kind: input, shape index: {}]   ;;  %s438_s4 = inlined_call_operand.vmem [shape: f32[1,96], index: 4, kind: input, shape index: {}]   ;;  %s439_s5 = inlined_call_operand.hbm [shape: f32[16,96], index: 5, kind: output, shape index: {}]  }
   0x1   :  { %11 = vsyncpa [#allocation6], 0  ;;  %s31_s20 = sshll.u32 %s435_s1, 4  ;;  %s32_s20 = int_to_ptr.hbm [resolvable:$true] %s31_s20 }
   0x2   :  { %12 = vsyncpa [#allocation4], 0  ;;  %s354_s21 = smov [#allocation5]   ;;  %s17_s25 = sshll.u32 %s434_s0, 4  ;;  %s18_s25 = int_to_ptr.hbm [resolvable:$true] %s17_s25 }
   0x3   :  { %s33_s22 = sshll.u32 %s354_s21, 4  ;;  %s355_s26 = smov [#allocation2]   ;;  %s34_s22 = int_to_ptr.vmem [resolvable:$true] %s33_s22 }
   0x4   :  { %36 = dma.hbm_to_vmem [thread:$0]  %s32_s20, 16, %s34_s22, [#allocation6]  }
   0x5   :  { %s19_s27 = sshll.u32 %s355_s26, 4  ;;  %s356_s28 = smov 128   ;;  %s20_s27 = int_to_ptr.vmem [resolvable:$true] %s19_s27 }
   0x6   :  { %s357_s29 = smov 8   ;;  %s43_s6 = sshll.u32 %s437_s3, 4  ;;  %s44_s6 = int_to_ptr.hbm [resolvable:$true] %s43_s6 }
   0x7   :  { %25 = dma.hbm_to_vmem [thread:$0]  %s18_s25, 256, %s20_s27, [#allocation3], %s356_s28, %s356_s28, %s357_s29  }
   0x8   :  { %s358_s7 = smov [#allocation7]  }
   0x9   :  { %s45_s8 = sshll.u32 %s358_s7, 4  ;;  %s46_s8 = int_to_ptr.vmem [resolvable:$true] %s45_s8 }
   0xa   :  { %51 = dma.hbm_to_vmem [thread:$0]  %s44_s6, 512, %s46_s8, [#allocation6], %s356_s28, %s356_s28, %s357_s29  }
   0xb   :  { %348 = dma.done.wait [#allocation3], 256  }
   0xc   :  { %349 = vsyncadd [#allocation3], 4294967040 }
   0xd   :  { %350 = dma.done.wait [#allocation6], 528  }
   0xe   :  { %351 = vsyncadd [#allocation6], 4294966768  ;;  %vm68_vm0 = vcmask 261120   ;;  %v66_v0 = vld [vmem:[#allocation2] sm:$0xff]  ;;  %v67_v2 = vld [vmem:[#allocation2 + $0x8] sm:$0xff]  ;;  %v359_v4 = vmov 32.0  }
   0xf   :  { %v69_v1 = vsel %vm68_vm0, %v66_v0, 0.0  ;;  %v72_v3 = vsel %vm68_vm0, %v67_v2, 0.0  ;;  %242 = vrcp.f32 %v359_v4  ;;  %v169_v21 = vld [vmem:[#allocation7 + $0x18] sm:$0xff]  ;;  %v168_v22 = vld [vmem:[#allocation7 + $0x10] sm:$0xff]  ;;  %v167_v24 = vld [vmem:[#allocation7 + $0x8] sm:$0xff]  ;;  %vm203_vm14 = vcmask 785408  }
  0x10   :  { %70 = vadd.xlane.f32.xlu0 %v69_v1  ;;  %192 = vmatpush.msra.mxu0 %v169_v21  ;;  %v166_v26 = vld [vmem:[#allocation7] sm:$0xff]  ;;  %v239_v61 = vld [vmem:[#allocation5] ss:$0 sm:$0xff]  ;;  %v240_v1 = vld [vmem:[%s436_s2] ss:$0 sm:$0xff]  ;;  %s360_s10 = smov [#allocation8]  }
  0x11   :  { %228 = vmatpush.msra.mxu1 %v169_v21  ;;  %s210_s11 = sshll.u32 %s360_s10, 4  ;;  %s212_s14 = sshll.u32 %s439_s5, 4  ;;  %s211_s11 = int_to_ptr.vmem [resolvable:$true] %s210_s11  ;;  %s213_s14 = int_to_ptr.hbm [resolvable:$true] %s212_s14 }
  0x12   :  { %193 = vmatpush.msra.mxu0 %v168_v22 }
  0x13   :  { %229 = vmatpush.msra.mxu1 %v168_v22 }
  0x14   :  { %194 = vmatpush.msra.mxu0 %v167_v24 }
  0x15   :  { %v243_v5 = vpop.eup %242  ;;  %230 = vmatpush.msra.mxu1 %v167_v24 }
  0x16   :  { %v76_v6 = vmul.f32 32.0, %v243_v5  ;;  %vm80_vm1 = vweird.f32 %v243_v5  ;;  %195 = vmatpush.msra.mxu0 %v166_v26 }
  0x17   :  { %231 = vmatpush.msra.mxu1 %v166_v26 }
  0x18   :  { %73 = vadd.xlane.f32.xlu0 %v72_v3  ;;  %v77_v7 = vsub.f32 1.0, %v76_v6 }
  0x1a   :  { %v78_v8 = vmul.f32 %v243_v5, %v77_v7 }
  0x1c   :  { %v79_v9 = vadd.f32 %v243_v5, %v78_v8 }
  0x1e   :  { %v81_v10 = vsel %vm80_vm1, %v243_v5, %v79_v9 }
  0x83   :  { %v71_v11 = vpop.xlane.xlu0 %70 }
  0x84   :  { %v82_v12 = vmul.f32 %v81_v10, %v71_v11 }
  0x86   :  { %v408_v13 = vsub.f32 %v66_v0, %v82_v12 }
  0x88   :  { %v86_v14 = vmul.f32 %v408_v13, %v408_v13 }
  0x8a   :  { %v88_v15 = vsel %vm68_vm0, %v86_v14, 0.0 }
  0x8b   :  { %89 = vadd.xlane.f32.xlu1 %v88_v15  ;;  %v74_v16 = vpop.xlane.xlu0 %73  ;;  %v241_v15 = vld [vmem:[%s438_s4] ss:$0 sm:$0xff] }
  0x8c   :  { %v83_v17 = vmul.f32 %v81_v10, %v74_v16 }
  0x8e   :  { %v413_v18 = vsub.f32 %v67_v2, %v83_v17 }
  0x90   :  { %v87_v19 = vmul.f32 %v413_v18, %v413_v18 }
  0x92   :  { %v91_v20 = vsel %vm68_vm0, %v87_v19, 0.0 }
  0x93   :  { %92 = vadd.xlane.f32.xlu1 %v91_v20 }
  0xfe   :  { %v90_v23 = vpop.xlane.xlu1 %89 }
  0xff   :  { %v94_v25 = vmul.f32 0.032258064, %v90_v23 }
 0x101   :  { %244 = vrsqrt.f32 %v94_v25  ;;  %vm103_vm2 = vcmp.eq.f32.partialorder %v94_v25, inf  ;;  %v106_v39 = vand.u32 2147483648, %v94_v25  ;;  %vm105_vm3 = vcmp.eq.f32.partialorder %v94_v25, 0.0 }
 0x106   :  { %v93_v27 = vpop.xlane.xlu1 %92 }
 0x107   :  { %v245_v28 = vpop.eup %244  ;;  %v95_v29 = vmul.f32 0.032258064, %v93_v27 }
 0x108   :  { %v97_v30 = vmul.f32 %v245_v28, %v94_v25 }
 0x109   :  { %246 = vrsqrt.f32 %v95_v29  ;;  %vm115_vm4 = vcmp.eq.f32.partialorder %v95_v29, inf  ;;  %v118_v47 = vand.u32 2147483648, %v95_v29  ;;  %vm117_vm5 = vcmp.eq.f32.partialorder %v95_v29, 0.0 }
 0x10a   :  { %v98_v31 = vmul.f32 %v245_v28, %v97_v30 }
 0x10c   :  { %v99_v32 = vmul.f32 0.5, %v98_v31 }
 0x10e   :  { %v100_v33 = vsub.f32 1.5, %v99_v32 }
 0x10f   :  { %v247_v34 = vpop.eup %246 }
 0x110   :  { %v101_v35 = vmul.f32 %v245_v28, %v100_v33  ;;  %v109_v36 = vmul.f32 %v247_v34, %v95_v29 }
 0x112   :  { %v102_v37 = vmul.f32 %v101_v35, %v94_v25  ;;  %v110_v38 = vmul.f32 %v247_v34, %v109_v36 }
 0x114   :  { %v104_v40 = vsel %vm103_vm2, %v94_v25, %v102_v37  ;;  %v111_v41 = vmul.f32 0.5, %v110_v38 }
 0x115   :  { %v107_v42 = vsel %vm105_vm3, %v106_v39, %v104_v40 }
 0x116   :  { %v112_v43 = vsub.f32 1.5, %v111_v41  ;;  %v120_v44 = vadd.f32 1e-06, %v107_v42 }
 0x118   :  { %v113_v45 = vmul.f32 %v247_v34, %v112_v43  ;;  %248 = vrcp.f32 %v120_v44  ;;  %v133_v54 = vand.u32 2147483648, %v120_v44  ;;  %v131_v56 = vand.u32 2147483647, %v120_v44 }
 0x119   :  { %vm127_vm7 = vweird.f32 %v120_v44 }
 0x11a   :  { %v114_v46 = vmul.f32 %v113_v45, %v95_v29  ;;  %v134_v59 = vor.u32 1.1754944e-38, %v133_v54  ;;  %vm132_vm9 = vcmp.eq.f32.partialorder %v131_v56, 8.507059e+37 }
 0x11c   :  { %v116_v48 = vsel %vm115_vm4, %v95_v29, %v114_v46 }
 0x11d   :  { %v119_v49 = vsel %vm117_vm5, %v118_v47, %v116_v48 }
 0x11e   :  { %v249_v50 = vpop.eup %248  ;;  %v121_v51 = vadd.f32 1e-06, %v119_v49 }
 0x11f   :  { %v123_v52 = vmul.f32 %v249_v50, %v120_v44  ;;  %vm128_vm6 = vweird.f32 %v249_v50 }
 0x120   :  { %250 = vrcp.f32 %v121_v51  ;;  %vm129_vm8 = vmor %vm127_vm7, %vm128_vm6  ;;  %v148_v3 = vand.u32 2147483648, %v121_v51  ;;  %v146_v6 = vand.u32 2147483647, %v121_v51  ;;  %vm142_vm11 = vweird.f32 %v121_v51 }
 0x121   :  { %v124_v53 = vsub.f32 1.0, %v123_v52 }
 0x122   :  { %v149_v9 = vor.u32 1.1754944e-38, %v148_v3  ;;  %vm147_vm13 = vcmp.eq.f32.partialorder %v146_v6, 8.507059e+37 }
 0x123   :  { %v125_v55 = vmul.f32 %v249_v50, %v124_v53 }
 0x125   :  { %v126_v57 = vadd.f32 %v249_v50, %v125_v55 }
 0x126   :  { %v251_v58 = vpop.eup %250 }
 0x127   :  { %v130_v60 = vsel %vm129_vm8, %v249_v50, %v126_v57  ;;  %v138_v62 = vmul.f32 %v251_v58, %v121_v51  ;;  %vm143_vm10 = vweird.f32 %v251_v58 }
 0x128   :  { %v135_v63 = vsel %vm132_vm9, %v134_v59, %v130_v60  ;;  %vm144_vm12 = vmor %vm142_vm11, %vm143_vm10 }
 0x129   :  { %v153_v0 = vmul.f32 %v135_v63, %v408_v13  ;;  %v139_v2 = vsub.f32 1.0, %v138_v62 }
 0x12b   :  { %v158_v4 = vmul.f32 %v239_v61, %v153_v0  ;;  %v140_v5 = vmul.f32 %v251_v58, %v139_v2 }
 0x12d   :  { %v164_v7 = vadd.f32 %v240_v1, %v158_v4  ;;  %v141_v8 = vadd.f32 %v251_v58, %v140_v5 }
 0x12f   :  { %226 = vmatmul.msk.f32.vlgmr.msra.gmra.mxu0 %vm68_vm0, %v164_v7  ;;  %v145_v10 = vsel %vm144_vm12, %v251_v58, %v141_v8 }
 0x130   :  { %v150_v11 = vsel %vm147_vm13, %v149_v9, %v145_v10 }
 0x131   :  { %v154_v12 = vmul.f32 %v150_v11, %v413_v18 }
 0x133   :  { %v159_v13 = vmul.f32 %v239_v61, %v154_v12 }
 0x135   :  { %v165_v14 = vadd.f32 %v240_v1, %v159_v13 }
 0x137   :  { %227 = vmatmul.msk.f32.vlgmr.msra.gmra.mxu1 %vm68_vm0, %v165_v14 }
 0x1ac   :  { %v197_v16 = vpop.f32.mrf.mxu0 }
 0x1ad   :  { %v198_v17 = vadd.f32 %v241_v15, %v197_v16 }
 0x1af   :  { %204 = vst.msk [vmem:[#allocation8] sm:$0xff] %vm203_vm14, %v198_v17 }
 0x1b4   :  { %v200_v19 = vpop.f32.mrf.mxu1 }
 0x1b5   :  { %v201_v18 = vadd.f32 %v241_v15, %v200_v19 }
 0x1b7   :  { %205 = vst.msk [vmem:[#allocation8 + $0x8] sm:$0xff] %vm203_vm14, %v201_v18 }
 0x1b8   :  { %218 = dma.vmem_to_hbm [thread:$0]  %s211_s11, 256, %s213_s14, [#allocation4], %s356_s28, %s356_s28, %s357_s29  }
 0x1b9   :  { %352 = dma.done.wait [#allocation4], 256  }
 0x1ba   :  { %353 = vsyncadd [#allocation4], 4294967040 }
 0x1bb   :  { %223 = vsyncpa [#allocation3], 1 }
 0x1bc   :  { %224 = vsyncpa [#allocation6], 1 }
 0x1bd   :  { %225 = vsyncpa [#allocation4], 1 }

</bundles_post_ra>
